<compile_context>
chip_gen: v6e
topology: v6e:2x2x1
jax: 0.10.0
libtpu: 0.0.40
codegen_flags: <defaults>
</compile_context>

<pallas_src>
import functools

import jax
import jax.numpy as jnp
from jax.experimental import pallas as pl
from jax.experimental.pallas import tpu as pltpu


_INV_SQRT2 = 0.7071067811865476


def _round_up(x, m):
    return -(-x // m) * m


def _wpa_head_kernel(x_ref, w1_ref, b1_ref, w2_ref, csum_ref, b2_ref, o_ref,
                     *, eps, approximate_gelu):
    # x_ref: (tm, H) token tile in the input dtype (f32); all params resident.
    mm_dtype = w1_ref.dtype

    # ---- dense: x @ W1^T + b1 (MXU, f32 accumulation; cast rides free VPU) ---
    x = x_ref[...].astype(mm_dtype)
    h = jnp.dot(x, w1_ref[...], preferred_element_type=jnp.float32)
    h = h + b1_ref[...]

    # ---- GELU (f32) -----------------------------------------------------------
    if approximate_gelu:
        # tanh-approx GELU -> transcendental on the EUP slot (idle under the MXU)
        g = jax.nn.gelu(h, approximate=True)
    else:
        # exact erf GELU == torch nn.GELU() default (bit-faithful path)
        g = 0.5 * h * (1.0 + jax.lax.erf(h * jnp.float32(_INV_SQRT2)))

    # ---- LayerNorm statistics (f32, single fused reduction pass) -------------
    inv_h = jnp.float32(1.0 / g.shape[-1])
    s1 = jnp.sum(g, axis=-1, keepdims=True)
    s2 = jnp.sum(g * g, axis=-1, keepdims=True)
    mean = s1 * inv_h
    var = jnp.maximum(s2 * inv_h - mean * mean, 0.0)   # guard one-pass cancellation
    inv = jax.lax.rsqrt(var + jnp.float32(eps))        # (tm, 1)

    # ---- decoder matmul on UN-normalized g; LN applied as per-row scalars ----
    #   y = inv * (g @ W2') - (mean*inv) * colsum(W2') + b2'
    # (gamma/beta already folded into W2'/b2' in prepare_params)
    z = jnp.dot(g.astype(mm_dtype), w2_ref[...],
                preferred_element_type=jnp.float32)     # (tm, 128)
    y = inv * z - (mean * inv) * csum_ref[...] + b2_ref[...]
    o_ref[...] = y.astype(o_ref.dtype)


def prepare_params(params, *, matmul_dtype=jnp.bfloat16, out_lanes=128):
    """One-time weight prep (call once, outside the step loop):
       * transpose W1 / W2 to [in, out] and cast MXU operands to matmul_dtype
       * fold LayerNorm gamma/beta into the decoder:  W2' = gamma[:,None] * W2.T,
         b2' = beta @ W2.T + b2
       * zero-pad the 2-wide decoder to a lane-dense 128-wide output
       * precompute colsum(W2') (f32) for the decoder-side LN shift term."""
    H = params["w1"].shape[0]
    out_dim = params["w2"].shape[0]            # 2
    n_lanes = max(out_lanes, out_dim)

    gamma = params["gamma"].astype(jnp.float32)
    beta = params["beta"].astype(jnp.float32)
    w2_t = params["w2"].T.astype(jnp.float32)                      # (H, out)

    w2_fold = gamma[:, None] * w2_t                                # (H, out)
    b2_fold = beta @ w2_t + params["b2"].astype(jnp.float32)       # (out,)

    w2p = jnp.zeros((H, n_lanes), matmul_dtype)
    w2p = w2p.at[:, :out_dim].set(w2_fold.astype(matmul_dtype))
    # column sums of the *stored* (possibly bf16) W2' so the shift term matches
    # the matmul operand exactly; accumulate in f32.
    csum = jnp.sum(w2p.astype(jnp.float32), axis=0, keepdims=True)  # (1, 128)
    b2p = jnp.zeros((1, n_lanes), jnp.float32)
    b2p = b2p.at[:, :out_dim].set(b2_fold)

    return {
        "w1_t": jnp.asarray(params["w1"].T, dtype=matmul_dtype),   # (H, H) [in,out]
        "b1": params["b1"].reshape(1, H).astype(jnp.float32),
        "w2p": w2p,                                                # (H, 128)
        "csum": csum,                                              # (1, 128) f32
        "b2p": b2p,                                                # (1, 128) f32
    }


@functools.partial(jax.jit,
                   static_argnames=("eps", "tm", "approximate_gelu", "num_outputs"))
def wpa_head(hidden_states, prep, *, eps=1e-5, tm=1024,
             approximate_gelu=True, num_outputs=2):
    """hidden_states: [B, S, H]. prep: output of prepare_params().
    Returns [B, S, num_outputs]."""
    B, S, H = hidden_states.shape
    N = B * S

    mm_dtype = prep["w1_t"].dtype
    n_lanes = prep["w2p"].shape[1]

    x2d = hidden_states.reshape(N, H)          # free reshape; cast happens in-kernel

    # Row tiling:
    #  * round the requested tm to sublanes (8)
    #  * cap at round_up(ceil(N/2), 8) so the parallel grid has >= 2 steps
    #    (feeds both v7x TensorCores; negligible cost on v5e/v6e)
    #  * if a single block covers everything, use the full row count (any N is
    #    legal when the block equals the array dim).
    # A non-dividing last tile is handled by Pallas OOB masking (reads of the
    # padded rows are garbage but LN/decoder are strictly per-row, and the OOB
    # store rows are masked), so no jnp.pad copy is needed.
    tm_eff = min(max(8, (min(tm, N) // 8) * 8), _round_up(pl.cdiv(N, 2), 8))
    if tm_eff >= N:
        tm_eff = N
    grid = pl.cdiv(N, tm_eff)

    store_dtype = mm_dtype                     # bf16 store halves padded writeback
    mm_bytes = jnp.dtype(mm_dtype).itemsize

    # Scoped VMEM budget: double-buffered x / out tiles + resident params +
    # headroom for the f32 h/g intermediates.  v5e's default scoped limit is
    # only 16 MiB, so set it explicitly; cap at 64 MiB for v7x physical VMEM.
    est = (2 * tm_eff * H * hidden_states.dtype.itemsize
           + 2 * tm_eff * n_lanes * jnp.dtype(store_dtype).itemsize
           + 2 * (H * H + H * n_lanes) * mm_bytes
           + 3 * tm_eff * H * 4
           + (2 << 20))
    vmem_limit = int(min(max(est, 32 << 20), 64 << 20))

    kernel = functools.partial(_wpa_head_kernel, eps=eps,
                               approximate_gelu=approximate_gelu)

    out2d = pl.pallas_call(
        kernel,
        out_shape=jax.ShapeDtypeStruct((N, n_lanes), store_dtype),
        grid=(grid,),
        in_specs=[
            pl.BlockSpec((tm_eff, H), lambda i: (i, 0)),    # x tile (f32, cast in-kernel)
            pl.BlockSpec((H, H), lambda i: (0, 0)),         # W1^T (resident)
            pl.BlockSpec((1, H), lambda i: (0, 0)),         # b1
            pl.BlockSpec((H, n_lanes), lambda i: (0, 0)),   # W2' (gamma-folded, lane-padded)
            pl.BlockSpec((1, n_lanes), lambda i: (0, 0)),   # colsum(W2')
            pl.BlockSpec((1, n_lanes), lambda i: (0, 0)),   # b2' (beta-folded, lane-padded)
        ],
        out_specs=pl.BlockSpec((tm_eff, n_lanes), lambda i: (i, 0)),
        compiler_params=pltpu.CompilerParams(
            dimension_semantics=("parallel",),
            vmem_limit_bytes=vmem_limit),
    )(x2d, prep["w1_t"], prep["b1"], prep["w2p"], prep["csum"], prep["b2p"])

    out = out2d[:, :num_outputs].astype(hidden_states.dtype)
    return out.reshape(B, S, num_outputs)


def init_params(key, hidden_size):
    """Deterministic synthetic parameters matching HeadForWPA shapes.
    gamma/beta/b2 are perturbed away from their PyTorch init values (ones /
    zeros) so the LN-affine fold into the decoder is actually exercised."""
    k1, k2, k3, k4, k5 = jax.random.split(key, 5)
    H = hidden_size
    scale = 1.0 / jnp.sqrt(jnp.float32(H))
    return {
        # nn.Linear(H, H): weight (H, H), bias (H,)
        "w1": jax.random.normal(k1, (H, H), jnp.float32) * scale,
        "b1": jax.random.normal(k3, (H,), jnp.float32) * 0.02,
        # nn.LayerNorm(H)
        "gamma": 1.0 + 0.1 * jax.random.normal(k4, (H,), jnp.float32),
        "beta": 0.05 * jax.random.normal(k5, (H,), jnp.float32),
        # nn.Linear(H, 2, bias=False): weight (2, H); tied bias param (2,)
        "w2": jax.random.normal(k2, (2, H), jnp.float32) * scale,
        "b2": 0.01 * jnp.arange(2, dtype=jnp.float32),
    }


def _reference(hidden_states, params, eps=1e-5):
    h = hidden_states @ params["w1"].T + params["b1"]
    h = 0.5 * h * (1.0 + jax.lax.erf(h / jnp.sqrt(2.0)))
    mean = jnp.mean(h, axis=-1, keepdims=True)
    var = jnp.mean((h - mean) ** 2, axis=-1, keepdims=True)
    h = (h - mean) * jax.lax.rsqrt(var + eps) * params["gamma"] + params["beta"]
    return h @ params["w2"].T + params["b2"]


if __name__ == "__main__":
    key = jax.random.PRNGKey(0)
    kx, kp = jax.random.split(key)

    B, S, H = 2, 8, 32
    hidden_states = jax.random.normal(kx, (B, S, H), jnp.float32)
    params = init_params(kp, H)
    ref = _reference(hidden_states, params, eps=1e-5)

    # f32 matmuls + exact erf GELU: same math as the PyTorch module -> tight check.
    prep_f32 = prepare_params(params, matmul_dtype=jnp.float32)
    out_f32 = jax.block_until_ready(
        wpa_head(hidden_states, prep_f32, eps=1e-5, approximate_gelu=False))
    assert out_f32.shape == (B, S, 2)
    assert jnp.allclose(out_f32, ref, atol=1e-4, rtol=1e-4), "f32 path mismatch"

    # Default perf path: bf16 MXU operands, tanh GELU, f32 stats/accumulation.
    prep_bf16 = prepare_params(params)  # matmul_dtype=bf16
    out_bf16 = jax.block_until_ready(wpa_head(hidden_states, prep_bf16, eps=1e-5))
    assert out_bf16.shape == (B, S, 2)
    assert jnp.allclose(out_bf16, ref, atol=5e-2, rtol=5e-2), "bf16 path mismatch"

    print("KERNEL_OK")
</pallas_src>

<mosaic_0001>
module attributes {stable_mosaic.version = 11 : i64} {
  func.func @_wpa_head_kernel(%arg0: i32, %arg1: memref<8x32xf32, #tpu.memory_space<vmem>>, %arg2: memref<32x32xf32, #tpu.memory_space<vmem>>, %arg3: memref<1x32xf32, #tpu.memory_space<vmem>>, %arg4: memref<32x128xf32, #tpu.memory_space<vmem>>, %arg5: memref<1x128xf32, #tpu.memory_space<vmem>>, %arg6: memref<1x128xf32, #tpu.memory_space<vmem>>, %arg7: memref<8x128xf32, #tpu.memory_space<vmem>>) attributes {dimension_semantics = [#tpu.dimension_semantics<parallel>], iteration_bounds = array<i64: 2>, scalar_prefetch = 0 : i64, scratch_operands = 0 : i64, tpu.core_type = #tpu.core_type<tc>, window_params = [{transform_indices = @transform_0, window_bounds = array<i64: 8, 32>}, {pipeline_mode = #tpu.pipeline_mode<synchronous>, transform_indices = @transform_1, window_bounds = array<i64: 32, 32>}, {pipeline_mode = #tpu.pipeline_mode<synchronous>, transform_indices = @transform_2, window_bounds = array<i64: 1, 32>}, {pipeline_mode = #tpu.pipeline_mode<synchronous>, transform_indices = @transform_3, window_bounds = array<i64: 32, 128>}, {pipeline_mode = #tpu.pipeline_mode<synchronous>, transform_indices = @transform_4, window_bounds = array<i64: 1, 128>}, {pipeline_mode = #tpu.pipeline_mode<synchronous>, transform_indices = @transform_5, window_bounds = array<i64: 1, 128>}, {transform_indices = @transform_6, window_bounds = array<i64: 8, 128>}]} {
    %c0 = arith.constant 0 : index
    %c0_0 = arith.constant 0 : index
    %0 = vector.load %arg1[%c0, %c0_0] : memref<8x32xf32, #tpu.memory_space<vmem>>, vector<8x32xf32>
    %c0_1 = arith.constant 0 : index
    %c0_2 = arith.constant 0 : index
    %1 = vector.load %arg2[%c0_1, %c0_2] : memref<32x32xf32, #tpu.memory_space<vmem>>, vector<32x32xf32>
    %cst = arith.constant dense<0.000000e+00> : vector<8x32xf32>
    %2 = tpu.matmul %0, %1, %cst {dimension_numbers = #tpu.dot_dimension_numbers<[1], [0], [0], [1], [0, 0, 1, 1], [], []>} : vector<8x32xf32>, vector<32x32xf32>, vector<8x32xf32> -> vector<8x32xf32>
    %c0_3 = arith.constant 0 : index
    %c0_4 = arith.constant 0 : index
    %3 = vector.load %arg3[%c0_3, %c0_4] : memref<1x32xf32, #tpu.memory_space<vmem>>, vector<1x32xf32>
    %4 = vector.broadcast %3 : vector<1x32xf32> to vector<8x32xf32>
    %5 = arith.addf %2, %4 : vector<8x32xf32>
    %cst_5 = arith.constant 5.000000e-01 : f32
    %6 = vector.broadcast %cst_5 : f32 to vector<8x32xf32>
    %7 = arith.mulf %6, %5 : vector<8x32xf32>
    %cst_6 = arith.constant 0.707106769 : f32
    %8 = vector.broadcast %cst_6 : f32 to vector<8x32xf32>
    %9 = arith.mulf %5, %8 : vector<8x32xf32>
    %10 = math.erf %9 : vector<8x32xf32>
    %cst_7 = arith.constant 1.000000e+00 : f32
    %11 = vector.broadcast %cst_7 : f32 to vector<8x32xf32>
    %12 = arith.addf %11, %10 : vector<8x32xf32>
    %13 = arith.mulf %7, %12 : vector<8x32xf32>
    %cst_8 = arith.constant dense<0.000000e+00> : vector<8xf32>
    %14 = vector.multi_reduction <add>, %13, %cst_8 [1] : vector<8x32xf32> to vector<8xf32>
    %15 = vector.shape_cast %14 : vector<8xf32> to vector<8x1xf32>
    %16 = arith.mulf %13, %13 : vector<8x32xf32>
    %cst_9 = arith.constant dense<0.000000e+00> : vector<8xf32>
    %17 = vector.multi_reduction <add>, %16, %cst_9 [1] : vector<8x32xf32> to vector<8xf32>
    %18 = vector.shape_cast %17 : vector<8xf32> to vector<8x1xf32>
    %cst_10 = arith.constant 3.125000e-02 : f32
    %19 = vector.broadcast %cst_10 : f32 to vector<8x1xf32>
    %20 = arith.mulf %15, %19 : vector<8x1xf32>
    %cst_11 = arith.constant 3.125000e-02 : f32
    %21 = vector.broadcast %cst_11 : f32 to vector<8x1xf32>
    %22 = arith.mulf %18, %21 : vector<8x1xf32>
    %23 = arith.mulf %20, %20 : vector<8x1xf32>
    %24 = arith.subf %22, %23 : vector<8x1xf32>
    %cst_12 = arith.constant 0.000000e+00 : f32
    %25 = vector.broadcast %cst_12 : f32 to vector<8x1xf32>
    %26 = arith.maximumf %24, %25 : vector<8x1xf32>
    %cst_13 = arith.constant 9.99999974E-6 : f32
    %27 = vector.broadcast %cst_13 : f32 to vector<8x1xf32>
    %28 = arith.addf %26, %27 : vector<8x1xf32>
    %29 = math.rsqrt %28 : vector<8x1xf32>
    %c0_14 = arith.constant 0 : index
    %c0_15 = arith.constant 0 : index
    %30 = vector.load %arg4[%c0_14, %c0_15] : memref<32x128xf32, #tpu.memory_space<vmem>>, vector<32x128xf32>
    %cst_16 = arith.constant dense<0.000000e+00> : vector<8x128xf32>
    %31 = tpu.matmul %13, %30, %cst_16 {dimension_numbers = #tpu.dot_dimension_numbers<[1], [0], [0], [1], [0, 0, 1, 1], [], []>} : vector<8x32xf32>, vector<32x128xf32>, vector<8x128xf32> -> vector<8x128xf32>
    %32 = vector.broadcast %29 : vector<8x1xf32> to vector<8x128xf32>
    %33 = arith.mulf %32, %31 : vector<8x128xf32>
    %34 = arith.mulf %20, %29 : vector<8x1xf32>
    %c0_17 = arith.constant 0 : index
    %c0_18 = arith.constant 0 : index
    %35 = vector.load %arg5[%c0_17, %c0_18] : memref<1x128xf32, #tpu.memory_space<vmem>>, vector<1x128xf32>
    %36 = vector.broadcast %34 : vector<8x1xf32> to vector<8x128xf32>
    %37 = vector.broadcast %35 : vector<1x128xf32> to vector<8x128xf32>
    %38 = arith.mulf %36, %37 : vector<8x128xf32>
    %39 = arith.subf %33, %38 : vector<8x128xf32>
    %c0_19 = arith.constant 0 : index
    %c0_20 = arith.constant 0 : index
    %40 = vector.load %arg6[%c0_19, %c0_20] : memref<1x128xf32, #tpu.memory_space<vmem>>, vector<1x128xf32>
    %41 = vector.broadcast %40 : vector<1x128xf32> to vector<8x128xf32>
    %42 = arith.addf %39, %41 : vector<8x128xf32>
    %c0_21 = arith.constant 0 : index
    %c0_22 = arith.constant 0 : index
    %43 = vector.load %arg7[%c0_21, %c0_22] : memref<8x128xf32, #tpu.memory_space<vmem>>, vector<8x128xf32>
    tpu.vector_store %arg7[%c0_21, %c0_22], %42 {strides = array<i32>} : memref<8x128xf32, #tpu.memory_space<vmem>>, vector<8x128xf32>,
    return
  }
  func.func @transform_0(%arg0: i32) -> (i32, i32) {
    %c0_i32 = arith.constant 0 : i32
    %c0_i32_0 = arith.constant 0 : i32
    return %arg0, %c0_i32 : i32, i32
  }
  func.func @transform_1(%arg0: i32) -> (i32, i32) {
    %c0_i32 = arith.constant 0 : i32
    %c0_i32_0 = arith.constant 0 : i32
    %c0_i32_1 = arith.constant 0 : i32
    return %c0_i32, %c0_i32_0 : i32, i32
  }
  func.func @transform_2(%arg0: i32) -> (i32, i32) {
    %c0_i32 = arith.constant 0 : i32
    %c0_i32_0 = arith.constant 0 : i32
    %c0_i32_1 = arith.constant 0 : i32
    return %c0_i32, %c0_i32_0 : i32, i32
  }
  func.func @transform_3(%arg0: i32) -> (i32, i32) {
    %c0_i32 = arith.constant 0 : i32
    %c0_i32_0 = arith.constant 0 : i32
    %c0_i32_1 = arith.constant 0 : i32
    return %c0_i32, %c0_i32_0 : i32, i32
  }
  func.func @transform_4(%arg0: i32) -> (i32, i32) {
    %c0_i32 = arith.constant 0 : i32
    %c0_i32_0 = arith.constant 0 : i32
    %c0_i32_1 = arith.constant 0 : i32
    return %c0_i32, %c0_i32_0 : i32, i32
  }
  func.func @transform_5(%arg0: i32) -> (i32, i32) {
    %c0_i32 = arith.constant 0 : i32
    %c0_i32_0 = arith.constant 0 : i32
    %c0_i32_1 = arith.constant 0 : i32
    return %c0_i32, %c0_i32_0 : i32, i32
  }
  func.func @transform_6(%arg0: i32) -> (i32, i32) {
    %c0_i32 = arith.constant 0 : i32
    %c0_i32_0 = arith.constant 0 : i32
    return %arg0, %c0_i32 : i32, i32
  }
}

</mosaic_0001>

<bundles_post_ra>
// kernel: wpa_head.1
= control target key start
LH: loop header
LB: loop body
LE: loop exit
PB: predicated region body
PF: predicated region fallthrough
CT: control target
= control target key end

     0   :  { %11 = vsyncpa [#allocation3], 0  ;;  %s1004_s0 = inlined_call_operand.hbm [shape: f32[16,32], index: 0, kind: input, shape index: {}]   ;;  %s1005_s1 = inlined_call_operand.hbm [shape: f32[32,32], index: 1, kind: input, shape index: {}]   ;;  %s1006_s2 = inlined_call_operand.vmem [shape: f32[1,32], index: 2, kind: input, shape index: {}]   ;;  %s1007_s3 = inlined_call_operand.hbm [shape: f32[32,128], index: 3, kind: input, shape index: {}]   ;;  %s1008_s4 = inlined_call_operand.vmem [shape: f32[1,128], index: 4, kind: input, shape index: {}]   ;;  %s1009_s5 = inlined_call_operand.vmem [shape: f32[1,128], index: 5, kind: input, shape index: {}]   ;;  %s1010_s6 = inlined_call_operand.vmem [shape: f32[16,128], index: 6, kind: output, shape index: {}]  }
   0x1   :  { %13 = vsyncpa [#allocation3 + $0x1], 0 }
   0x2   :  { %14 = vsyncpa [#allocation5], 0  ;;  %s863_s21 = smov 0   ;;  %s865_s22 = smov 0  }
   0x3   :  { %s867_s23 = smov 0   ;;  %s869_s24 = smov 0  }
   0x4 LB: > { %s882_s25 = sadd.s32 4294967295, %s819_s24   ;;  %p40_p0 = scmp.ne.s32.totalorder %s811_s22, %s807_s21  ;;  %s819_s24 = sphi %s869_s24, %s1026_s24   ;;  %s815_s23 = sphi %s867_s23, %s1025_s23   ;;  %s811_s22 = sphi %s865_s22, %s1024_s22   ;;  %s807_s21 = sphi %s863_s21, %s1023_s21  }
   0x5   : > { %p1011_p1 = scmp.eq.s32.totalorder %s882_s25, 0  ;;  %p583_p2 = scmp.ge.s32.totalorder %s819_s24, 1 }
   0x6   : > { %p182_p3 = scmp.lt.s32.totalorder %s819_s24, 3  ;;  %s821_s28 = smov [#allocation4]  }
   0x7   : > { %p890_p4 = por %p1011_p1, %p40_p0  ;;  %s194_s29 = sshll.u32 %s821_s28, 4  ;;  %s195_s29 = int_to_ptr.vmem [resolvable:$true] %s194_s29 }
   0x8   : > { %p894_p5 = pnand %p583_p2, %p182_p3  ;;  %s822_s7 = smov [#allocation6]  }
   0x9   : > { %s1014_s26 = scalar_select %p890_p4, 1, 0 }
   0xa   : > { %s1015_s27 = scalar_select %p894_p5, 1, 0 }
   0xb   : > { %p643_p6 = pneg %p894_p5  ;;  %s210_s8 = sshll.u32 %s822_s7, 4  ;;  %s211_s8 = int_to_ptr.vmem [resolvable:$true] %s210_s8 }
   0xc   : > { %s712_s9 = scalar_lea.vmem %s195_s29, 512  ;;  %p720_p12 = scmp.lt.s32.totalorder %s195_s29, %s195_s29 }
   0xd   : > { %p902_p7 = pnand %p643_p6, %p1011_p1  ;;  %p713_p9 = scmp.ne.s32.totalorder %s195_s29, %s712_s9 }
   0xe   : > { %p721_p13 = scmp.lt.s32.totalorder %s712_s9, %s712_s9 }
   0xf   : > { %p703_p8 = pneg %p902_p7 }
  0x10   : > { %p722_p0 = por %p721_p13, %p720_p12 }
  0x11   : > { %p715_p10 = pnand %p713_p9, %p703_p8 }
  0x13   : > { %p716_p11 = pneg %p715_p10 }
  0x15   : > { %p723_p2 = pnand %p722_p0, %p716_p11 }
  0x17   : > { %726 = shalt.err (!%p723_p2)
}
  0x18   : > { %s823_s10 = smov 128   ;;  %s824_s11 = smov 8  }
  0x19   : > { %646 = dma.hbm_to_vmem [thread:$0]  (!%p902_p7), %s1005_s1, 512, %s195_s29, [#allocation5], %s823_s10, %s823_s10, %s824_s11  }
  0x1a   : > { %s738_s14 = scalar_lea.vmem %s211_s8, 512  ;;  %p746_p10 = scmp.lt.s32.totalorder %s211_s8, %s211_s8 }
  0x1b   : > { %p739_p3 = scmp.ne.s32.totalorder %s211_s8, %s738_s14  ;;  %p747_p1 = scmp.lt.s32.totalorder %s738_s14, %s738_s14 }
  0x1d   : > { %p741_p6 = pnand %p739_p3, %p703_p8  ;;  %p748_p12 = por %p747_p1, %p746_p10 }
  0x1f   : > { %p742_p9 = pneg %p741_p6 }
  0x21   : > { %p749_p11 = pnand %p748_p12, %p742_p9 }
  0x23   : > { %752 = shalt.err (!%p749_p11)
}
  0x24   : > { %649 = dma.hbm_to_vmem [thread:$0]  (!%p902_p7), %s1007_s3, 512, %s211_s8, [#allocation5], %s823_s10, %s823_s10, %s824_s11  }
  0x25   : > { %s925_s17 = sadd.s32 1, %s819_s24   ;;  %s27_s18 = sadd.s32 1, %s815_s23 }
  0x26   : > { %s24_s19 = ssub.s32 %s819_s24, %s925_s17  ;;  %p34_p1 = scmp.ne.s32.totalorder %s815_s23, %s811_s22 }
  0x27   : > { %p25_p8 = scmp.eq.s32.totalorder %s24_s19, 0  ;;  %p35_p13 = scmp.eq.s32.totalorder %s819_s24, 0 }
  0x28   : > { %p656_p0 = scmp.lt.s32.totalorder %s819_s24, 2  ;;  %s230_s20 = sand.u32 1, %s815_s23  }
  0x29   : > { %s936_s21 = scalar_select %p25_p8, %s815_s23, %s27_s18  }
  0x2a   : > { %p36_p2 = por %p35_p13, %p34_p1  ;;  %s587_s28 = sshll.u32 %s230_s20, 3 }
  0x2b   : > { %s588_s29 = sshll.u32 %s819_s24, 7  ;;  %s234_s8 = scalar_lea.vmem [#allocation2], %s587_s28 }
  0x2c   : > { %s942_s9 = scalar_lea.hbm %s1004_s0, %s588_s29  ;;  %s241_s10 = sshll.u32 %s234_s8, 4  ;;  %s242_s10 = int_to_ptr.vmem [resolvable:$true] %s241_s10 }
  0x2d   : > { %p944_p7 = pnand %p656_p0, %p36_p2  ;;  %s231_s12 = scalar_lea.sflag [#allocation3], %s230_s20 }
  0x2e   : > { %s753_s13 = scalar_lea.hbm %s942_s9, 128  ;;  %s758_s15 = scalar_lea.hbm %s1004_s0, 256 }
  0x2f   : > { %p754_p3 = scmp.ne.s32.totalorder %s942_s9, %s753_s13  ;;  %p755_p6 = pneg %p944_p7 }
  0x30   : > { %p759_p12 = scmp.lt.s32.totalorder %s942_s9, %s1004_s0  ;;  %p760_p11 = scmp.lt.s32.totalorder %s758_s15, %s753_s13 }
  0x31   : > { %p756_p9 = pnand %p755_p6, %p754_p3 }
  0x32   : > { %p761_p1 = por %p760_p11, %p759_p12 }
  0x33   : > { %p757_p10 = pneg %p756_p9 }
  0x35   : > { %p762_p8 = pnand %p761_p1, %p757_p10 }
  0x37   : > { %765 = shalt.err (!%p762_p8)
}
  0x38   : > { %s766_s19 = scalar_lea.vmem %s242_s10, 128  ;;  %s825_s20 = smov [#allocation2]  }
  0x39   : > { %p767_p13 = scmp.ne.s32.totalorder %s242_s10, %s766_s19  ;;  %s771_s28 = sshll.u32 %s825_s20, 4  ;;  %s772_s28 = int_to_ptr.vmem [resolvable:$false] %s771_s28 }
  0x3a   : > { %s773_s29 = scalar_lea.vmem %s772_s28, 256  ;;  %p774_p3 = scmp.lt.s32.totalorder %s242_s10, %s772_s28 }
  0x3b   : > { %p769_p0 = pnand %p767_p13, %p755_p6  ;;  %p775_p9 = scmp.lt.s32.totalorder %s773_s29, %s766_s19 }
  0x3d   : > { %p770_p2 = pneg %p769_p0  ;;  %p776_p4 = por %p775_p9, %p774_p3 }
  0x3f   : > { %p777_p5 = pnand %p776_p4, %p770_p2 }
  0x41   : > { %780 = shalt.err (!%p777_p5)
}
  0x42   : > { %653 = dma.hbm_to_vmem [thread:$0]  (!%p944_p7), %s942_s9, 128, %s242_s10, %s231_s12  }
  0x43   : > { %p1018_p10 = scmp.ne.s32.totalorder %s1015_s27, 0 }
  0x44   : > { %s252_s30 = sand.u32 (!%p1018_p10), 1, %s811_s22   ;;  %p1019_p6 = scmp.ne.s32.totalorder (!%p1018_p10), %s1014_s26, 0 }
  0x45   : > { %250 = sbr.rel (%p1018_p10) target bundleno = 503 (0x1f7), region = 44  ;;  %s590_s7 = sshll.u32 (!%p1018_p10), %s252_s30, 3 }
  0x46   : > { %s253_s8 = scalar_lea.sflag (!%p1018_p10), [#allocation3], %s252_s30  ;;  %s256_s13 = scalar_lea.vmem (!%p1018_p10), [#allocation2], %s590_s7 }
  0x4a   : > { %798 = dma.done.wait (%p1019_p6), %s253_s8, 128  }
  0x4b   : > { %800 = vsyncadd (%p1019_p6), %s253_s8, 4294967168  ;;  %p1020_p4 = scmp.eq.s32.totalorder %s882_s25, 0 }
  0x4d   : > { %802 = dma.done.wait (%p1020_p4), [#allocation5], 1024   ;;  %p1021_p5 = pmov %p1020_p4 }
  0x4e   : > { %v826_v0 = vmov 0.0   ;;  %vm827_vm0 = vmmov 0   ;;  %v300_v1 = vld [vmem:[#allocation4 + $0x18] sm:$0xff]  ;;  %v299_v2 = vld [vmem:[#allocation4 + $0x10] sm:$0xff]  ;;  %v298_v3 = vld [vmem:[#allocation4 + $0x8] sm:$0xff]  ;;  %vm308_vm1 = vcmask 261120  }
  0x4f   : > { %804 = vsyncadd (%p1021_p5), [#allocation5], 4294966272  ;;  %611 = vmatprep.subr.mxu0 %v826_v0  ;;  %619 = vmatprep.mubr.msk.f32.mxu0 %vm827_vm0, %v826_v0  ;;  %v297_v4 = vld [vmem:[#allocation4] sm:$0xff]  ;;  %v296_v5 = vld [vmem:[%s256_s13] sm:$0xff]  ;;  %p292_p7 = scmp.lt.s32.totalorder %s882_s25, 1 }
  0x50   : > { %622 = vmatprep.subr.mxu1 %v826_v0  ;;  %630 = vmatprep.mubr.msk.f32.mxu1 %vm827_vm0, %v826_v0  ;;  %v404_v6 = vld [vmem:[#allocation6 + $0x18] sm:$0xff]  ;;  %v403_v7 = vld [vmem:[#allocation6 + $0x10] sm:$0xff]  ;;  %v402_v8 = vld [vmem:[#allocation6 + $0x8] sm:$0xff] }
  0x51   : > { %612 = vmatpush3.msra.mxu0 %v300_v1  ;;  %623 = vmatpush3.msra.mxu1 %v404_v6  ;;  %v401_v9 = vld [vmem:[#allocation6] sm:$0xff]  ;;  %v594_v10 = vld [vmem:[%s1006_s2] ss:$0 sm:$0xff]  ;;  %s1028_s25 = smov (!%p292_p7, %s882_s25), 1 }
  0x52   : > { %613 = vmatprep.subr.mxu0 %v826_v0  ;;  %624 = vmatprep.subr.mxu1 %v826_v0  ;;  %v597_v32 = vld [vmem:[%s1008_s4] ss:$0 sm:$0xff]  ;;  %s593_s11 = sshll.u32 %s1028_s25, 3 }
  0x53   : > { %614 = vmatpush3.msra.mxu0 %v299_v2  ;;  %625 = vmatpush3.msra.mxu1 %v403_v7  ;;  %v598_v36 = vld [vmem:[%s1009_s5] ss:$0 sm:$0xff]  ;;  %s295_s16 = scalar_lea.vmem %s1010_s6, %s593_s11 }
  0x54   : > { %615 = vmatprep.subr.mxu0 %v826_v0  ;;  %626 = vmatprep.subr.mxu1 %v826_v0 }
  0x55   : > { %616 = vmatpush3.msra.mxu0 %v298_v3  ;;  %627 = vmatpush3.msra.mxu1 %v402_v8 }
  0x56   : > { %617 = vmatprep.subr.mxu0 %v826_v0  ;;  %628 = vmatprep.subr.mxu1 %v826_v0 }
  0x57   : > { %618 = vmatpush3.msra.mxu0 %v297_v4  ;;  %629 = vmatpush3.msra.mxu1 %v401_v9 }
  0x58   : > { %620 = vmatmul.mubr.msk.f32.vlgmr.msra.gmra.mxu0 %vm308_vm1, %v296_v5 }
 0x118   : > { %v378_v11 = vpop.f32.mrf.mxu0 }
 0x119   : > { %v379_v12 = vadd.f32 %v594_v10, %v378_v11 }
 0x11a   : > { %v621_v13 = vpop.f32.mrf.mxu0 }
 0x11b   : > { %v383_v14 = vmul.f32 0.70710677, %v379_v12  ;;  %v382_v16 = vmul.f32 0.5, %v379_v12 }
 0x11d   : > { %697 = verf.f32 %v383_v14 }
 0x12a   : > { %v698_v15 = vpop.eup %697 }
 0x12b   : > { %v385_v17 = vadd.f32 1.0, %v698_v15 }
 0x12d   : > { %v386_v18 = vmul.f32 %v385_v17, %v382_v16 }
 0x12f   : > { %631 = vmatmul.mubr.msk.f32.vlgmr.msra.gmra.mxu1 %vm308_vm1, %v386_v18  ;;  %v387_v19 = vsel %vm308_vm1, %v386_v18, 0.0  ;;  %v390_v20 = vmul.f32 %v386_v18, %v386_v18 }
 0x130   : > { %388 = vadd.xlane.f32.xlu0 %v387_v19 }
 0x131   : > { %v391_v21 = vsel %vm308_vm1, %v390_v20, 0.0 }
 0x134   : > { %392 = vadd.xlane.f32.xlu0 %v391_v21 }
 0x1b9   : > { %v389_v22 = vpop.xlane.xlu0 %388 }
 0x1ba   : > { %v394_v24 = vmul.f32 0.03125, %v389_v22 }
 0x1bc   : > { %v396_v26 = vmul.f32 %v394_v24, %v394_v24 }
 0x1bd   : > { %v393_v23 = vpop.xlane.xlu0 %392 }
 0x1be   : > { %v395_v25 = vmul.f32 0.03125, %v393_v23 }
 0x1c0   : > { %v397_v27 = vsub.f32 %v395_v25, %v396_v26 }
 0x1c2   : > { %v398_v28 = vmax.f32 %v397_v27, 0.0 }
 0x1c4   : > { %v399_v29 = vadd.f32 1e-05, %v398_v28 }
 0x1c6   : > { %699 = vrsqrt.f32 %v399_v29 }
 0x1d3   : > { %v700_v30 = vpop.eup %699 }
 0x1d4   : > { %v479_v31 = vmul.f32 %v700_v30, %v394_v24 }
 0x1d6   : > { %v487_v35 = vmul.f32 %v597_v32, %v479_v31 }
 0x1ef   : > { %v474_v33 = vpop.f32.mrf.mxu1 }
 0x1f0   : > { %v478_v34 = vmul.f32 %v700_v30, %v474_v33 }
 0x1f1   : > { %v632_v37 = vpop.f32.mrf.mxu1 }
 0x1f2   : > { %v488_v38 = vsub.f32 %v478_v34, %v487_v35 }
 0x1f4   : > { %v496_v39 = vadd.f32 %v598_v36, %v488_v38 }
 0x1f6   : > { %497 = vst [vmem:[%s295_s16] sm:$0xff] %v496_v39 }
 0x1f7 PF: > { %s1022_s18 = smov %s936_s21  ;;  %p17_p12 = scmp.ge.s32.totalorder %s925_s17, 4  }
 0x1f8   : > { %s1023_s21 = smov %s811_s22  ;;  %s1024_s22 = smov %s815_s23 }
 0x1f9   : > { %s1025_s23 = smov %s1022_s18  ;;  %s1026_s24 = smov %s925_s17 }
 0x1fa   :  { %19 = sbr.rel (!%p17_p12) target bundleno = 4 (0x4), region = 92 }
 0x1ff   :  { %517 = vsyncpa [#allocation3], 1 }
 0x200   :  { %519 = vsyncpa [#allocation3 + $0x1], 1 }
 0x201   :  { %520 = vsyncpa [#allocation5], 1 }

</bundles_post_ra>
